<compile_context>
chip_gen: v5e
topology: v5e:2x2
jax: 0.10.0
libtpu: 0.0.40
codegen_flags: <defaults>
</compile_context>

<pallas_src>
import jax
import jax.numpy as jnp
from jax.experimental import pallas as pl
from jax.experimental.pallas import tpu as pltpu

LAMBDA1 = 1.0
LAMBDA2 = 0.01

LANES = 128
# 14 fields * 2 pipeline buffers * 512*128*4 B ≈ 7.3 MiB — fits the default
# scoped VMEM limit on v5e (16 MiB), v6e (32 MiB) and v7x (32 MiB), and per
# measured data 512-row tiles already sit at ~85% of HBM roofline.
MAX_TILE_ROWS = 512


def _pinn_loss_kernel(u_ref, v_ref,
                      u_t_ref, v_t_ref,
                      u_x_ref, u_y_ref,
                      v_x_ref, v_y_ref,
                      p_x_ref, p_y_ref,
                      u_xx_ref, u_yy_ref,
                      v_xx_ref, v_yy_ref,
                      out_ref):
    s = pl.program_id(1)  # reduction ("arbitrary") axis

    @pl.when(s == 0)
    def _():
        out_ref[...] = jnp.zeros_like(out_ref)

    u = u_ref[...]
    v = v_ref[...]

    f = (u_t_ref[...]
         + LAMBDA1 * (u * u_x_ref[...] + v * u_y_ref[...])
         + p_x_ref[...]
         - LAMBDA2 * (u_xx_ref[...] + u_yy_ref[...]))
    g = (v_t_ref[...]
         + LAMBDA1 * (u * v_x_ref[...] + v * v_y_ref[...])
         + p_y_ref[...]
         - LAMBDA2 * (v_xx_ref[...] + v_yy_ref[...]))

    sq = f * f + g * g                                    # (tile_rows, 128)
    # Per-(sublane, lane) partial sums: the (R,128)->(R/8,8,128) reshape is the
    # native vreg layout and the axis-0 sum is pure VALU vreg adds — the
    # cross-lane (XLU) reduce is deferred to the wrapper, once, outside the
    # hot streaming loop.
    partial = sq.reshape(-1, 8, sq.shape[-1]).sum(axis=0)  # (8, 128)
    out_ref[...] += partial[None]                          # resident accumulator


def pinn_residual_loss(u, v, u_t, v_t, u_x, u_y, v_x, v_y,
                       p_x, p_y, u_xx, u_yy, v_xx, v_yy):
    """All args are float32 arrays of shape (N,); N must be a multiple of 1024."""
    n = u.shape[0]
    assert n % (8 * LANES) == 0, "N must be a multiple of 1024"
    rows = n // LANES

    # Largest multiple-of-8 row tile that divides `rows`, capped for VMEM.
    # For small N (e.g. the demo) this is the whole array -> a single grid
    # step with everything resident, no pipeline overhead at all.
    tile_rows = 8
    for cand in range(min(rows, MAX_TILE_ROWS), 7, -8):
        if rows % cand == 0:
            tile_rows = cand
            break
    n_steps = rows // tile_rows

    # Split the row-tile stream into 2 chunks when possible so v7x's two
    # TensorCores can each take one (leading "parallel" grid axis). Each chunk
    # writes its own (8,128) partial-sum slot -> no cross-core race; v5e/v6e
    # simply iterate both chunks on their single core.
    n_chunks = 2 if (n_steps >= 2 and n_steps % 2 == 0) else 1
    steps_per_chunk = n_steps // n_chunks

    fields = [a.reshape(rows, LANES).astype(jnp.float32)
              for a in (u, v, u_t, v_t, u_x, u_y, v_x, v_y,
                        p_x, p_y, u_xx, u_yy, v_xx, v_yy)]

    in_spec = pl.BlockSpec((tile_rows, LANES),
                           lambda c, s: (c * steps_per_chunk + s, 0))
    out_spec = pl.BlockSpec((1, 8, LANES), lambda c, s: (c, 0, 0))

    partials = pl.pallas_call(
        _pinn_loss_kernel,
        out_shape=jax.ShapeDtypeStruct((n_chunks, 8, LANES), jnp.float32),
        grid=(n_chunks, steps_per_chunk),
        in_specs=[in_spec] * 14,
        out_specs=out_spec,
        compiler_params=pltpu.CompilerParams(
            dimension_semantics=("parallel", "arbitrary")),
    )(*fields)

    # criterion = nn.MSELoss(): loss = sum(f^2)/N + sum(g^2)/N
    return jnp.sum(partials) / jnp.float32(n)


# ---------------------------------------------------------------------------
# Synthetic "network" u, v, p = MLP(x, y, t) and its derivatives (plain JAX
# glue — torch.autograd.grad graph traversal has no Pallas equivalent).
# TODO(synk): autodiff of the upstream network is done with jax.jacfwd outside
#             the kernel; only the residual + MSE hot path is in Pallas.
# ---------------------------------------------------------------------------
HID = 32
_kw = jax.random.split(jax.random.PRNGKey(42), 3)
W1 = 0.5 * jax.random.normal(_kw[0], (3, HID), dtype=jnp.float32)
b1 = jnp.zeros((HID,), jnp.float32)
W2 = 0.3 * jax.random.normal(_kw[1], (HID, HID), dtype=jnp.float32)
b2 = jnp.zeros((HID,), jnp.float32)
W3 = 0.3 * jax.random.normal(_kw[2], (HID, 3), dtype=jnp.float32)
b3 = jnp.zeros((3,), jnp.float32)


def uvp_point(xyz):
    h = jnp.tanh(xyz @ W1 + b1)
    h = jnp.tanh(h @ W2 + b2)
    return h @ W3 + b3  # (3,) -> (u, v, p)


def point_value_jac_hess(xyz):
    val = uvp_point(xyz)                              # (3,)
    jac = jax.jacfwd(uvp_point)(xyz)                  # (3, 3)  d out_i / d in_j
    hess = jax.jacfwd(jax.jacfwd(uvp_point))(xyz)     # (3, 3, 3)
    return val, jac, hess


def reference_loss(u, v, u_t, v_t, u_x, u_y, v_x, v_y,
                   p_x, p_y, u_xx, u_yy, v_xx, v_yy):
    f = u_t + LAMBDA1 * (u * u_x + v * u_y) + p_x - LAMBDA2 * (u_xx + u_yy)
    g = v_t + LAMBDA1 * (u * v_x + v * v_y) + p_y - LAMBDA2 * (v_xx + v_yy)
    return jnp.mean(f * f) + jnp.mean(g * g)


if __name__ == "__main__":
    N = 2048  # collocation points; (N, 1) per coordinate in the torch module

    kx, ky, kt = jax.random.split(jax.random.PRNGKey(0), 3)
    x = jax.random.uniform(kx, (N, 1), dtype=jnp.float32)
    y = jax.random.uniform(ky, (N, 1), dtype=jnp.float32)
    t = jax.random.uniform(kt, (N, 1), dtype=jnp.float32)

    xyz = jnp.concatenate([x, y, t], axis=-1)  # (N, 3)

    vals, jacs, hess = jax.vmap(point_value_jac_hess)(xyz)

    u = vals[:, 0]
    v = vals[:, 1]
    # first derivatives: in-axis order is (x, y, t)
    u_x, u_y, u_t = jacs[:, 0, 0], jacs[:, 0, 1], jacs[:, 0, 2]
    v_x, v_y, v_t = jacs[:, 1, 0], jacs[:, 1, 1], jacs[:, 1, 2]
    p_x, p_y = jacs[:, 2, 0], jacs[:, 2, 1]
    # second derivatives
    u_xx, u_yy = hess[:, 0, 0, 0], hess[:, 0, 1, 1]
    v_xx, v_yy = hess[:, 1, 0, 0], hess[:, 1, 1, 1]

    args = (u, v, u_t, v_t, u_x, u_y, v_x, v_y,
            p_x, p_y, u_xx, u_yy, v_xx, v_yy)

    loss = pinn_residual_loss(*args)
    loss = jax.block_until_ready(loss)

    ref = reference_loss(*args)
    assert jnp.allclose(loss, ref, rtol=1e-5, atol=1e-6), (loss, ref)

    print("KERNEL_OK")
</pallas_src>

<mosaic_0001>
module attributes {stable_mosaic.version = 11 : i64} {
  func.func @_pinn_loss_kernel(%arg0: i32, %arg1: i32, %arg2: memref<16x128xf32, #tpu.memory_space<vmem>>, %arg3: memref<16x128xf32, #tpu.memory_space<vmem>>, %arg4: memref<16x128xf32, #tpu.memory_space<vmem>>, %arg5: memref<16x128xf32, #tpu.memory_space<vmem>>, %arg6: memref<16x128xf32, #tpu.memory_space<vmem>>, %arg7: memref<16x128xf32, #tpu.memory_space<vmem>>, %arg8: memref<16x128xf32, #tpu.memory_space<vmem>>, %arg9: memref<16x128xf32, #tpu.memory_space<vmem>>, %arg10: memref<16x128xf32, #tpu.memory_space<vmem>>, %arg11: memref<16x128xf32, #tpu.memory_space<vmem>>, %arg12: memref<16x128xf32, #tpu.memory_space<vmem>>, %arg13: memref<16x128xf32, #tpu.memory_space<vmem>>, %arg14: memref<16x128xf32, #tpu.memory_space<vmem>>, %arg15: memref<16x128xf32, #tpu.memory_space<vmem>>, %arg16: memref<1x8x128xf32, #tpu.memory_space<vmem>>) attributes {dimension_semantics = [#tpu.dimension_semantics<parallel>, #tpu.dimension_semantics<arbitrary>], iteration_bounds = array<i64: 1, 1>, scalar_prefetch = 0 : i64, scratch_operands = 0 : i64, tpu.core_type = #tpu.core_type<tc>, window_params = [{transform_indices = @transform_0, window_bounds = array<i64: 16, 128>}, {transform_indices = @transform_1, window_bounds = array<i64: 16, 128>}, {transform_indices = @transform_2, window_bounds = array<i64: 16, 128>}, {transform_indices = @transform_3, window_bounds = array<i64: 16, 128>}, {transform_indices = @transform_4, window_bounds = array<i64: 16, 128>}, {transform_indices = @transform_5, window_bounds = array<i64: 16, 128>}, {transform_indices = @transform_6, window_bounds = array<i64: 16, 128>}, {transform_indices = @transform_7, window_bounds = array<i64: 16, 128>}, {transform_indices = @transform_8, window_bounds = array<i64: 16, 128>}, {transform_indices = @transform_9, window_bounds = array<i64: 16, 128>}, {transform_indices = @transform_10, window_bounds = array<i64: 16, 128>}, {transform_indices = @transform_11, window_bounds = array<i64: 16, 128>}, {transform_indices = @transform_12, window_bounds = array<i64: 16, 128>}, {transform_indices = @transform_13, window_bounds = array<i64: 16, 128>}, {transform_indices = @transform_14, window_bounds = array<i64: 1, 8, 128>}]} {
    %c0_i32 = arith.constant 0 : i32
    %0 = arith.cmpi eq, %arg1, %c0_i32 : i32
    %1 = arith.extui %0 : i1 to i32
    %c0_i32_0 = arith.constant 0 : i32
    %2 = arith.cmpi ne, %1, %c0_i32_0 : i32
    scf.if %2 {
      %cst_38 = arith.constant 0.000000e+00 : f32
      %48 = vector.broadcast %cst_38 : f32 to vector<1x8x128xf32>
      %c0_39 = arith.constant 0 : index
      %c0_40 = arith.constant 0 : index
      %c0_41 = arith.constant 0 : index
      %49 = vector.load %arg16[%c0_39, %c0_40, %c0_41] : memref<1x8x128xf32, #tpu.memory_space<vmem>>, vector<1x8x128xf32>
      tpu.vector_store %arg16[%c0_39, %c0_40, %c0_41], %48 {strides = array<i32>} : memref<1x8x128xf32, #tpu.memory_space<vmem>>, vector<1x8x128xf32>,
    } else {
    }
    %c0 = arith.constant 0 : index
    %c0_1 = arith.constant 0 : index
    %3 = vector.load %arg2[%c0, %c0_1] : memref<16x128xf32, #tpu.memory_space<vmem>>, vector<16x128xf32>
    %c0_2 = arith.constant 0 : index
    %c0_3 = arith.constant 0 : index
    %4 = vector.load %arg3[%c0_2, %c0_3] : memref<16x128xf32, #tpu.memory_space<vmem>>, vector<16x128xf32>
    %c0_4 = arith.constant 0 : index
    %c0_5 = arith.constant 0 : index
    %5 = vector.load %arg4[%c0_4, %c0_5] : memref<16x128xf32, #tpu.memory_space<vmem>>, vector<16x128xf32>
    %c0_6 = arith.constant 0 : index
    %c0_7 = arith.constant 0 : index
    %6 = vector.load %arg6[%c0_6, %c0_7] : memref<16x128xf32, #tpu.memory_space<vmem>>, vector<16x128xf32>
    %7 = arith.mulf %3, %6 : vector<16x128xf32>
    %c0_8 = arith.constant 0 : index
    %c0_9 = arith.constant 0 : index
    %8 = vector.load %arg7[%c0_8, %c0_9] : memref<16x128xf32, #tpu.memory_space<vmem>>, vector<16x128xf32>
    %9 = arith.mulf %4, %8 : vector<16x128xf32>
    %10 = arith.addf %7, %9 : vector<16x128xf32>
    %cst = arith.constant 1.000000e+00 : f32
    %11 = vector.broadcast %cst : f32 to vector<16x128xf32>
    %12 = arith.mulf %11, %10 : vector<16x128xf32>
    %13 = arith.addf %5, %12 : vector<16x128xf32>
    %c0_10 = arith.constant 0 : index
    %c0_11 = arith.constant 0 : index
    %14 = vector.load %arg10[%c0_10, %c0_11] : memref<16x128xf32, #tpu.memory_space<vmem>>, vector<16x128xf32>
    %15 = arith.addf %13, %14 : vector<16x128xf32>
    %c0_12 = arith.constant 0 : index
    %c0_13 = arith.constant 0 : index
    %16 = vector.load %arg12[%c0_12, %c0_13] : memref<16x128xf32, #tpu.memory_space<vmem>>, vector<16x128xf32>
    %c0_14 = arith.constant 0 : index
    %c0_15 = arith.constant 0 : index
    %17 = vector.load %arg13[%c0_14, %c0_15] : memref<16x128xf32, #tpu.memory_space<vmem>>, vector<16x128xf32>
    %18 = arith.addf %16, %17 : vector<16x128xf32>
    %cst_16 = arith.constant 0.00999999977 : f32
    %19 = vector.broadcast %cst_16 : f32 to vector<16x128xf32>
    %20 = arith.mulf %19, %18 : vector<16x128xf32>
    %21 = arith.subf %15, %20 : vector<16x128xf32>
    %c0_17 = arith.constant 0 : index
    %c0_18 = arith.constant 0 : index
    %22 = vector.load %arg5[%c0_17, %c0_18] : memref<16x128xf32, #tpu.memory_space<vmem>>, vector<16x128xf32>
    %c0_19 = arith.constant 0 : index
    %c0_20 = arith.constant 0 : index
    %23 = vector.load %arg8[%c0_19, %c0_20] : memref<16x128xf32, #tpu.memory_space<vmem>>, vector<16x128xf32>
    %24 = arith.mulf %3, %23 : vector<16x128xf32>
    %c0_21 = arith.constant 0 : index
    %c0_22 = arith.constant 0 : index
    %25 = vector.load %arg9[%c0_21, %c0_22] : memref<16x128xf32, #tpu.memory_space<vmem>>, vector<16x128xf32>
    %26 = arith.mulf %4, %25 : vector<16x128xf32>
    %27 = arith.addf %24, %26 : vector<16x128xf32>
    %cst_23 = arith.constant 1.000000e+00 : f32
    %28 = vector.broadcast %cst_23 : f32 to vector<16x128xf32>
    %29 = arith.mulf %28, %27 : vector<16x128xf32>
    %30 = arith.addf %22, %29 : vector<16x128xf32>
    %c0_24 = arith.constant 0 : index
    %c0_25 = arith.constant 0 : index
    %31 = vector.load %arg11[%c0_24, %c0_25] : memref<16x128xf32, #tpu.memory_space<vmem>>, vector<16x128xf32>
    %32 = arith.addf %30, %31 : vector<16x128xf32>
    %c0_26 = arith.constant 0 : index
    %c0_27 = arith.constant 0 : index
    %33 = vector.load %arg14[%c0_26, %c0_27] : memref<16x128xf32, #tpu.memory_space<vmem>>, vector<16x128xf32>
    %c0_28 = arith.constant 0 : index
    %c0_29 = arith.constant 0 : index
    %34 = vector.load %arg15[%c0_28, %c0_29] : memref<16x128xf32, #tpu.memory_space<vmem>>, vector<16x128xf32>
    %35 = arith.addf %33, %34 : vector<16x128xf32>
    %cst_30 = arith.constant 0.00999999977 : f32
    %36 = vector.broadcast %cst_30 : f32 to vector<16x128xf32>
    %37 = arith.mulf %36, %35 : vector<16x128xf32>
    %38 = arith.subf %32, %37 : vector<16x128xf32>
    %39 = arith.mulf %21, %21 : vector<16x128xf32>
    %40 = arith.mulf %38, %38 : vector<16x128xf32>
    %41 = arith.addf %39, %40 : vector<16x128xf32>
    %42 = vector.shape_cast %41 : vector<16x128xf32> to vector<2x8x128xf32>
    %cst_31 = arith.constant dense<0.000000e+00> : vector<8x128xf32>
    %43 = vector.multi_reduction <add>, %42, %cst_31 [0] : vector<2x8x128xf32> to vector<8x128xf32>
    %c0_32 = arith.constant 0 : index
    %c0_33 = arith.constant 0 : index
    %c0_34 = arith.constant 0 : index
    %44 = vector.load %arg16[%c0_32, %c0_33, %c0_34] : memref<1x8x128xf32, #tpu.memory_space<vmem>>, vector<1x8x128xf32>
    %45 = vector.shape_cast %43 : vector<8x128xf32> to vector<1x8x128xf32>
    %46 = arith.addf %44, %45 : vector<1x8x128xf32>
    %c0_35 = arith.constant 0 : index
    %c0_36 = arith.constant 0 : index
    %c0_37 = arith.constant 0 : index
    %47 = vector.load %arg16[%c0_35, %c0_36, %c0_37] : memref<1x8x128xf32, #tpu.memory_space<vmem>>, vector<1x8x128xf32>
    tpu.vector_store %arg16[%c0_35, %c0_36, %c0_37], %46 {strides = array<i32>} : memref<1x8x128xf32, #tpu.memory_space<vmem>>, vector<1x8x128xf32>,
    return
  }
  func.func @transform_0(%arg0: i32, %arg1: i32) -> (i32, i32) {
    %c1_i32 = arith.constant 1 : i32
    %0 = arith.muli %arg0, %c1_i32 : i32
    %1 = arith.addi %0, %arg1 : i32
    %c0_i32 = arith.constant 0 : i32
    %c0_i32_0 = arith.constant 0 : i32
    return %1, %c0_i32 : i32, i32
  }
  func.func @transform_1(%arg0: i32, %arg1: i32) -> (i32, i32) {
    %c1_i32 = arith.constant 1 : i32
    %0 = arith.muli %arg0, %c1_i32 : i32
    %1 = arith.addi %0, %arg1 : i32
    %c0_i32 = arith.constant 0 : i32
    %c0_i32_0 = arith.constant 0 : i32
    return %1, %c0_i32 : i32, i32
  }
  func.func @transform_2(%arg0: i32, %arg1: i32) -> (i32, i32) {
    %c1_i32 = arith.constant 1 : i32
    %0 = arith.muli %arg0, %c1_i32 : i32
    %1 = arith.addi %0, %arg1 : i32
    %c0_i32 = arith.constant 0 : i32
    %c0_i32_0 = arith.constant 0 : i32
    return %1, %c0_i32 : i32, i32
  }
  func.func @transform_3(%arg0: i32, %arg1: i32) -> (i32, i32) {
    %c1_i32 = arith.constant 1 : i32
    %0 = arith.muli %arg0, %c1_i32 : i32
    %1 = arith.addi %0, %arg1 : i32
    %c0_i32 = arith.constant 0 : i32
    %c0_i32_0 = arith.constant 0 : i32
    return %1, %c0_i32 : i32, i32
  }
  func.func @transform_4(%arg0: i32, %arg1: i32) -> (i32, i32) {
    %c1_i32 = arith.constant 1 : i32
    %0 = arith.muli %arg0, %c1_i32 : i32
    %1 = arith.addi %0, %arg1 : i32
    %c0_i32 = arith.constant 0 : i32
    %c0_i32_0 = arith.constant 0 : i32
    return %1, %c0_i32 : i32, i32
  }
  func.func @transform_5(%arg0: i32, %arg1: i32) -> (i32, i32) {
    %c1_i32 = arith.constant 1 : i32
    %0 = arith.muli %arg0, %c1_i32 : i32
    %1 = arith.addi %0, %arg1 : i32
    %c0_i32 = arith.constant 0 : i32
    %c0_i32_0 = arith.constant 0 : i32
    return %1, %c0_i32 : i32, i32
  }
  func.func @transform_6(%arg0: i32, %arg1: i32) -> (i32, i32) {
    %c1_i32 = arith.constant 1 : i32
    %0 = arith.muli %arg0, %c1_i32 : i32
    %1 = arith.addi %0, %arg1 : i32
    %c0_i32 = arith.constant 0 : i32
    %c0_i32_0 = arith.constant 0 : i32
    return %1, %c0_i32 : i32, i32
  }
  func.func @transform_7(%arg0: i32, %arg1: i32) -> (i32, i32) {
    %c1_i32 = arith.constant 1 : i32
    %0 = arith.muli %arg0, %c1_i32 : i32
    %1 = arith.addi %0, %arg1 : i32
    %c0_i32 = arith.constant 0 : i32
    %c0_i32_0 = arith.constant 0 : i32
    return %1, %c0_i32 : i32, i32
  }
  func.func @transform_8(%arg0: i32, %arg1: i32) -> (i32, i32) {
    %c1_i32 = arith.constant 1 : i32
    %0 = arith.muli %arg0, %c1_i32 : i32
    %1 = arith.addi %0, %arg1 : i32
    %c0_i32 = arith.constant 0 : i32
    %c0_i32_0 = arith.constant 0 : i32
    return %1, %c0_i32 : i32, i32
  }
  func.func @transform_9(%arg0: i32, %arg1: i32) -> (i32, i32) {
    %c1_i32 = arith.constant 1 : i32
    %0 = arith.muli %arg0, %c1_i32 : i32
    %1 = arith.addi %0, %arg1 : i32
    %c0_i32 = arith.constant 0 : i32
    %c0_i32_0 = arith.constant 0 : i32
    return %1, %c0_i32 : i32, i32
  }
  func.func @transform_10(%arg0: i32, %arg1: i32) -> (i32, i32) {
    %c1_i32 = arith.constant 1 : i32
    %0 = arith.muli %arg0, %c1_i32 : i32
    %1 = arith.addi %0, %arg1 : i32
    %c0_i32 = arith.constant 0 : i32
    %c0_i32_0 = arith.constant 0 : i32
    return %1, %c0_i32 : i32, i32
  }
  func.func @transform_11(%arg0: i32, %arg1: i32) -> (i32, i32) {
    %c1_i32 = arith.constant 1 : i32
    %0 = arith.muli %arg0, %c1_i32 : i32
    %1 = arith.addi %0, %arg1 : i32
    %c0_i32 = arith.constant 0 : i32
    %c0_i32_0 = arith.constant 0 : i32
    return %1, %c0_i32 : i32, i32
  }
  func.func @transform_12(%arg0: i32, %arg1: i32) -> (i32, i32) {
    %c1_i32 = arith.constant 1 : i32
    %0 = arith.muli %arg0, %c1_i32 : i32
    %1 = arith.addi %0, %arg1 : i32
    %c0_i32 = arith.constant 0 : i32
    %c0_i32_0 = arith.constant 0 : i32
    return %1, %c0_i32 : i32, i32
  }
  func.func @transform_13(%arg0: i32, %arg1: i32) -> (i32, i32) {
    %c1_i32 = arith.constant 1 : i32
    %0 = arith.muli %arg0, %c1_i32 : i32
    %1 = arith.addi %0, %arg1 : i32
    %c0_i32 = arith.constant 0 : i32
    %c0_i32_0 = arith.constant 0 : i32
    return %1, %c0_i32 : i32, i32
  }
  func.func @transform_14(%arg0: i32, %arg1: i32) -> (i32, i32, i32) {
    %c0_i32 = arith.constant 0 : i32
    %c0_i32_0 = arith.constant 0 : i32
    %c0_i32_1 = arith.constant 0 : i32
    return %arg0, %c0_i32, %c0_i32_0 : i32, i32, i32
  }
}

</mosaic_0001>

<bundles_post_ra>
// kernel: tpu_custom_call.1
= control target key start
LH: loop header
LB: loop body
LE: loop exit
PB: predicated region body
PF: predicated region fallthrough
CT: control target
= control target key end

     0   :  { %19 = vsyncpa [#allocation3], 0  ;;  %s1024_s0 = inlined_call_operand.hbm [shape: f32[16,128], index: 0, kind: input, shape index: {}]   ;;  %s1025_s1 = inlined_call_operand.hbm [shape: f32[16,128], index: 1, kind: input, shape index: {}]   ;;  %s1026_s2 = inlined_call_operand.hbm [shape: f32[16,128], index: 2, kind: input, shape index: {}]   ;;  %s1027_s3 = inlined_call_operand.hbm [shape: f32[16,128], index: 3, kind: input, shape index: {}]   ;;  %s1028_s4 = inlined_call_operand.hbm [shape: f32[16,128], index: 4, kind: input, shape index: {}]   ;;  %s1029_s5 = inlined_call_operand.hbm [shape: f32[16,128], index: 5, kind: input, shape index: {}]   ;;  %s1030_s6 = inlined_call_operand.hbm [shape: f32[16,128], index: 6, kind: input, shape index: {}]   ;;  %s1031_s7 = inlined_call_operand.hbm [shape: f32[16,128], index: 7, kind: input, shape index: {}]   ;;  %s1032_s8 = inlined_call_operand.hbm [shape: f32[16,128], index: 8, kind: input, shape index: {}]   ;;  %s1033_s9 = inlined_call_operand.hbm [shape: f32[16,128], index: 9, kind: input, shape index: {}]   ;;  %s1034_s10 = inlined_call_operand.hbm [shape: f32[16,128], index: 10, kind: input, shape index: {}]   ;;  %s1035_s11 = inlined_call_operand.hbm [shape: f32[16,128], index: 11, kind: input, shape index: {}]   ;;  %s1036_s12 = inlined_call_operand.hbm [shape: f32[16,128], index: 12, kind: input, shape index: {}]   ;;  %s1037_s13 = inlined_call_operand.hbm [shape: f32[16,128], index: 13, kind: input, shape index: {}]   ;;  %s1038_s14 = inlined_call_operand.hbm [shape: f32[1,8,128], index: 14, kind: output, shape index: {}]  }
   0x1   :  { %20 = vsyncpa [#allocation6], 0 }
   0x2   :  { %21 = vsyncpa [#allocation9], 0 }
   0x3   :  { %22 = vsyncpa [#allocation12], 0 }
   0x4   :  { %23 = vsyncpa [#allocation15], 0 }
   0x5   :  { %24 = vsyncpa [#allocation18], 0 }
   0x6   :  { %25 = vsyncpa [#allocation21], 0 }
   0x7   :  { %26 = vsyncpa [#allocation24], 0 }
   0x8   :  { %27 = vsyncpa [#allocation4], 0  ;;  %s53_s15 = sshll.u32 %s1025_s1, 4  ;;  %s845_s16 = smov [#allocation5]   ;;  %s54_s15 = int_to_ptr.hbm [resolvable:$true] %s53_s15 }
   0x9   :  { %s55_s17 = sshll.u32 %s845_s16, 4  ;;  %s87_s20 = sshll.u32 %s1027_s3, 4  ;;  %s56_s17 = int_to_ptr.vmem [resolvable:$true] %s55_s17  ;;  %s88_s20 = int_to_ptr.hbm [resolvable:$true] %s87_s20 }
   0xa   :  { %s846_s21 = smov 128   ;;  %s847_s22 = smov 8  }
   0xb   :  { %61 = dma.hbm_to_vmem [thread:$0]  %s54_s15, 256, %s56_s17, [#allocation6], %s846_s21, %s846_s21, %s847_s22  }
   0xc   :  { %s848_s23 = smov [#allocation8]   ;;  %s121_s1 = sshll.u32 %s1029_s5, 4  ;;  %s122_s1 = int_to_ptr.hbm [resolvable:$true] %s121_s1 }
   0xd   :  { %s89_s24 = sshll.u32 %s848_s23, 4  ;;  %s155_s28 = sshll.u32 %s1031_s7, 4  ;;  %s90_s24 = int_to_ptr.vmem [resolvable:$true] %s89_s24  ;;  %s156_s28 = int_to_ptr.hbm [resolvable:$true] %s155_s28 }
   0xe   :  { %95 = dma.hbm_to_vmem [thread:$0]  %s88_s20, 256, %s90_s24, [#allocation9], %s846_s21, %s846_s21, %s847_s22  }
   0xf   :  { %s849_s29 = smov [#allocation11]   ;;  %s850_s15 = smov [#allocation14]  }
  0x10   :  { %s123_s30 = sshll.u32 %s849_s29, 4  ;;  %s157_s5 = sshll.u32 %s850_s15, 4  ;;  %s124_s30 = int_to_ptr.vmem [resolvable:$true] %s123_s30  ;;  %s158_s5 = int_to_ptr.vmem [resolvable:$true] %s157_s5 }
  0x11   :  { %129 = dma.hbm_to_vmem [thread:$0]  %s122_s1, 256, %s124_s30, [#allocation12], %s846_s21, %s846_s21, %s847_s22  }
  0x12   :  { %s189_s18 = sshll.u32 %s1033_s9, 4  ;;  %s223_s20 = sshll.u32 %s1035_s11, 4  ;;  %s190_s18 = int_to_ptr.hbm [resolvable:$true] %s189_s18  ;;  %s224_s20 = int_to_ptr.hbm [resolvable:$true] %s223_s20 }
  0x13   :  { %163 = dma.hbm_to_vmem [thread:$0]  %s156_s28, 256, %s158_s5, [#allocation15], %s846_s21, %s846_s21, %s847_s22  }
  0x14   :  { %s851_s23 = smov [#allocation17]   ;;  %s852_s25 = smov [#allocation20]  }
  0x15   :  { %s191_s24 = sshll.u32 %s851_s23, 4  ;;  %s225_s9 = sshll.u32 %s852_s25, 4  ;;  %s192_s24 = int_to_ptr.vmem [resolvable:$true] %s191_s24  ;;  %s226_s9 = int_to_ptr.vmem [resolvable:$true] %s225_s9 }
  0x16   :  { %197 = dma.hbm_to_vmem [thread:$0]  %s190_s18, 256, %s192_s24, [#allocation18], %s846_s21, %s846_s21, %s847_s22  }
  0x17   :  { %s36_s3 = sshll.u32 %s1024_s0, 4  ;;  %s70_s28 = sshll.u32 %s1026_s2, 4  ;;  %s37_s3 = int_to_ptr.hbm [resolvable:$true] %s36_s3  ;;  %s71_s28 = int_to_ptr.hbm [resolvable:$true] %s70_s28 }
  0x18   :  { %231 = dma.hbm_to_vmem [thread:$0]  %s224_s20, 256, %s226_s9, [#allocation21], %s846_s21, %s846_s21, %s847_s22  }
  0x19   :  { %s853_s29 = smov [#allocation2]   ;;  %s854_s15 = smov [#allocation7]  }
  0x1a   :  { %s38_s30 = sshll.u32 %s853_s29, 4  ;;  %s72_s0 = sshll.u32 %s854_s15, 4  ;;  %s39_s30 = int_to_ptr.vmem [resolvable:$true] %s38_s30  ;;  %s73_s0 = int_to_ptr.vmem [resolvable:$true] %s72_s0 }
  0x1b   :  { %44 = dma.hbm_to_vmem [thread:$0]  %s37_s3, 256, %s39_s30, [#allocation3], %s846_s21, %s846_s21, %s847_s22  }
  0x1c   :  { %s104_s17 = sshll.u32 %s1028_s4, 4  ;;  %s138_s7 = sshll.u32 %s1030_s6, 4  ;;  %s105_s17 = int_to_ptr.hbm [resolvable:$true] %s104_s17  ;;  %s139_s7 = int_to_ptr.hbm [resolvable:$true] %s138_s7 }
  0x1d   :  { %78 = dma.hbm_to_vmem [thread:$0]  %s71_s28, 256, %s73_s0, [#allocation6], %s846_s21, %s846_s21, %s847_s22  }
  0x1e   :  { %s855_s19 = smov [#allocation10]   ;;  %s856_s23 = smov [#allocation13]  }
  0x1f   :  { %s106_s20 = sshll.u32 %s855_s19, 4  ;;  %s140_s4 = sshll.u32 %s856_s23, 4  ;;  %s107_s20 = int_to_ptr.vmem [resolvable:$true] %s106_s20  ;;  %s141_s4 = int_to_ptr.vmem [resolvable:$true] %s140_s4 }
  0x20   :  { %112 = dma.hbm_to_vmem [thread:$0]  %s105_s17, 256, %s107_s20, [#allocation9], %s846_s21, %s846_s21, %s847_s22  }
  0x21   :  { %s172_s9 = sshll.u32 %s1032_s8, 4  ;;  %s206_s1 = sshll.u32 %s1034_s10, 4  ;;  %s173_s9 = int_to_ptr.hbm [resolvable:$true] %s172_s9  ;;  %s207_s1 = int_to_ptr.hbm [resolvable:$true] %s206_s1 }
  0x22   :  { %146 = dma.hbm_to_vmem [thread:$0]  %s139_s7, 256, %s141_s4, [#allocation12], %s846_s21, %s846_s21, %s847_s22  }
  0x23   :  { %s857_s3 = smov [#allocation16]   ;;  %s858_s27 = smov [#allocation19]  }
  0x24   :  { %s174_s11 = sshll.u32 %s857_s3, 4  ;;  %s208_s8 = sshll.u32 %s858_s27, 4  ;;  %s175_s11 = int_to_ptr.vmem [resolvable:$true] %s174_s11  ;;  %s209_s8 = int_to_ptr.vmem [resolvable:$true] %s208_s8 }
  0x25   :  { %180 = dma.hbm_to_vmem [thread:$0]  %s173_s9, 256, %s175_s11, [#allocation15], %s846_s21, %s846_s21, %s847_s22  }
  0x26   :  { %s240_s30 = sshll.u32 %s1036_s12, 4  ;;  %s257_s0 = sshll.u32 %s1037_s13, 4  ;;  %s241_s30 = int_to_ptr.hbm [resolvable:$true] %s240_s30  ;;  %s258_s0 = int_to_ptr.hbm [resolvable:$true] %s257_s0 }
  0x27   :  { %214 = dma.hbm_to_vmem [thread:$0]  %s207_s1, 256, %s209_s8, [#allocation18], %s846_s21, %s846_s21, %s847_s22  }
  0x28   :  { %s859_s5 = smov [#allocation22]   ;;  %s860_s17 = smov [#allocation23]  }
  0x29   :  { %s242_s16 = sshll.u32 %s859_s5, 4  ;;  %s259_s12 = sshll.u32 %s860_s17, 4  ;;  %s243_s16 = int_to_ptr.vmem [resolvable:$true] %s242_s16  ;;  %s260_s12 = int_to_ptr.vmem [resolvable:$true] %s259_s12 }
  0x2a   :  { %248 = dma.hbm_to_vmem [thread:$0]  %s241_s30, 256, %s243_s16, [#allocation21], %s846_s21, %s846_s21, %s847_s22  }
  0x2b   :  { %265 = dma.hbm_to_vmem [thread:$0]  %s258_s0, 256, %s260_s12, [#allocation24], %s846_s21, %s846_s21, %s847_s22  }
  0x2c   :  { %827 = dma.done.wait [#allocation3], 256  }
  0x2d   :  { %828 = vsyncadd [#allocation3], 4294967040 }
  0x2e   :  { %829 = dma.done.wait [#allocation6], 512  }
  0x2f   :  { %830 = vsyncadd [#allocation6], 4294966784 }
  0x30   :  { %831 = dma.done.wait [#allocation9], 512  }
  0x31   :  { %832 = vsyncadd [#allocation9], 4294966784 }
  0x32   :  { %833 = dma.done.wait [#allocation12], 512  }
  0x33   :  { %834 = vsyncadd [#allocation12], 4294966784 }
  0x34   :  { %835 = dma.done.wait [#allocation15], 512  }
  0x35   :  { %836 = vsyncadd [#allocation15], 4294966784 }
  0x36   :  { %837 = dma.done.wait [#allocation18], 512  }
  0x37   :  { %838 = vsyncadd [#allocation18], 4294966784 }
  0x38   :  { %839 = dma.done.wait [#allocation21], 512  }
  0x39   :  { %840 = vsyncadd [#allocation21], 4294966784 }
  0x3a   :  { %841 = dma.done.wait [#allocation24], 256  }
  0x3b   :  { %842 = vsyncadd [#allocation24], 4294967040  ;;  %v355_v0 = vld [vmem:[#allocation2] sm:$0xff]  ;;  %v356_v1 = vld [vmem:[#allocation2 + $0x8] sm:$0xff]  ;;  %s861_s13 = smov [#allocation25]   ;;  %s432_s18 = sshll.u32 %s1038_s14, 4  ;;  %s433_s18 = int_to_ptr.hbm [resolvable:$true] %s432_s18 }
  0x3c   :  { %v357_v2 = vld [vmem:[#allocation5] sm:$0xff]  ;;  %v358_v3 = vld [vmem:[#allocation5 + $0x8] sm:$0xff]  ;;  %v361_v4 = vld [vmem:[#allocation10] sm:$0xff]  ;;  %s430_s21 = sshll.u32 %s861_s13, 4  ;;  %s431_s21 = int_to_ptr.vmem [resolvable:$true] %s430_s21 }
  0x3d   :  { %v362_v5 = vld [vmem:[#allocation10 + $0x8] sm:$0xff]  ;;  %v365_v6 = vld [vmem:[#allocation11] sm:$0xff]  ;;  %v359_v7 = vld [vmem:[#allocation7] sm:$0xff]  ;;  %v363_v8 = vmul.f32 %v361_v4, %v355_v0 }
  0x3e   :  { %v364_v9 = vmul.f32 %v362_v5, %v356_v1  ;;  %v366_v10 = vld [vmem:[#allocation11 + $0x8] sm:$0xff]  ;;  %v367_v11 = vmul.f32 %v365_v6, %v357_v2  ;;  %v377_v13 = vld [vmem:[#allocation19] sm:$0xff]  ;;  %v378_v14 = vld [vmem:[#allocation19 + $0x8] sm:$0xff] }
  0x3f   :  { %v368_v12 = vmul.f32 %v366_v10, %v358_v3  ;;  %v379_v15 = vld [vmem:[#allocation20] sm:$0xff]  ;;  %v360_v16 = vld [vmem:[#allocation7 + $0x8] sm:$0xff]  ;;  %v373_v18 = vld [vmem:[#allocation16] sm:$0xff] }
  0x40   :  { %v369_v17 = vadd.f32 %v367_v11, %v363_v8  ;;  %v380_v19 = vld [vmem:[#allocation20 + $0x8] sm:$0xff]  ;;  %v381_v20 = vadd.f32 %v379_v15, %v377_v13  ;;  %v389_v23 = vld [vmem:[#allocation13] sm:$0xff]  ;;  %v390_v24 = vld [vmem:[#allocation13 + $0x8] sm:$0xff] }
  0x41   :  { %v370_v21 = vadd.f32 %v368_v12, %v364_v9  ;;  %v382_v22 = vadd.f32 %v380_v19, %v378_v14  ;;  %v393_v25 = vld [vmem:[#allocation14] sm:$0xff]  ;;  %v374_v27 = vld [vmem:[#allocation16 + $0x8] sm:$0xff]  ;;  %v391_v29 = vmul.f32 %v389_v23, %v355_v0  ;;  %v392_v30 = vmul.f32 %v390_v24, %v356_v1  ;;  %v394_v31 = vld [vmem:[#allocation14 + $0x8] sm:$0xff] }
  0x42   :  { %v371_v26 = vadd.f32 %v369_v17, %v359_v7  ;;  %v383_v28 = vmul.f32 0.01, %v381_v20  ;;  %v395_v34 = vmul.f32 %v393_v25, %v357_v2  ;;  %v396_v35 = vmul.f32 %v394_v31, %v358_v3  ;;  %v405_v36 = vld [vmem:[#allocation22] sm:$0xff]  ;;  %v406_v37 = vld [vmem:[#allocation22 + $0x8] sm:$0xff]  ;;  %v407_v38 = vld [vmem:[#allocation23] sm:$0xff] }
  0x43   :  { %v372_v32 = vadd.f32 %v370_v21, %v360_v16  ;;  %v384_v33 = vmul.f32 0.01, %v382_v22  ;;  %v387_v40 = vld [vmem:[#allocation8] sm:$0xff]  ;;  %v388_v41 = vld [vmem:[#allocation8 + $0x8] sm:$0xff]  ;;  %v409_v43 = vadd.f32 %v407_v38, %v405_v36 }
  0x44   :  { %v375_v39 = vadd.f32 %v373_v18, %v371_v26  ;;  %v408_v42 = vld [vmem:[#allocation23 + $0x8] sm:$0xff]  ;;  %v397_v45 = vadd.f32 %v395_v34, %v391_v29  ;;  %v398_v46 = vadd.f32 %v396_v35, %v392_v30  ;;  %v401_v49 = vld [vmem:[#allocation17] sm:$0xff] }
  0x45   :  { %v376_v44 = vadd.f32 %v374_v27, %v372_v32  ;;  %v410_v47 = vadd.f32 %v408_v42, %v406_v37  ;;  %v402_v50 = vld [vmem:[#allocation17 + $0x8] sm:$0xff]  ;;  %v411_v51 = vmul.f32 0.01, %v409_v43 }
  0x46   :  { %v385_v48 = vsub.f32 %v375_v39, %v383_v28  ;;  %v399_v53 = vadd.f32 %v397_v45, %v387_v40  ;;  %v400_v54 = vadd.f32 %v398_v46, %v388_v41 }
  0x47   :  { %v386_v52 = vsub.f32 %v376_v44, %v384_v33  ;;  %v412_v55 = vmul.f32 0.01, %v410_v47 }
  0x48   :  { %v403_v56 = vadd.f32 %v401_v49, %v399_v53  ;;  %v404_v57 = vadd.f32 %v402_v50, %v400_v54  ;;  %v415_v60 = vmul.f32 %v385_v48, %v385_v48 }
  0x49   :  { %v416_v61 = vmul.f32 %v386_v52, %v386_v52 }
  0x4a   :  { %v413_v58 = vsub.f32 %v403_v56, %v411_v51  ;;  %v414_v59 = vsub.f32 %v404_v57, %v412_v55 }
  0x4c   :  { %v417_v62 = vmul.f32 %v413_v58, %v413_v58  ;;  %v418_v63 = vmul.f32 %v414_v59, %v414_v59 }
  0x4e   :  { %v419_v0 = vadd.f32 %v417_v62, %v415_v60  ;;  %v420_v1 = vadd.f32 %v418_v63, %v416_v61 }
  0x50   :  { %v421_v2 = vadd.f32 %v420_v1, %v419_v0 }
  0x52   :  { %424 = vst [vmem:[#allocation25] sm:$0xff] %v421_v2 }
  0x53   :  { %435 = dma.vmem_to_hbm [thread:$0]  %s431_s21, 128, %s433_s18, [#allocation4]  }
  0x54   :  { %843 = dma.done.wait [#allocation4], 128  }
  0x55   :  { %844 = vsyncadd [#allocation4], 4294967168 }
  0x56   :  { %440 = vsyncpa [#allocation3], 1 }
  0x57   :  { %441 = vsyncpa [#allocation6], 1 }
  0x58   :  { %442 = vsyncpa [#allocation9], 1 }
  0x59   :  { %443 = vsyncpa [#allocation12], 1 }
  0x5a   :  { %444 = vsyncpa [#allocation15], 1 }
  0x5b   :  { %445 = vsyncpa [#allocation18], 1 }
  0x5c   :  { %446 = vsyncpa [#allocation21], 1 }
  0x5d   :  { %447 = vsyncpa [#allocation24], 1 }
  0x5e   :  { %448 = vsyncpa [#allocation4], 1 }

</bundles_post_ra>
